<compile_context>
chip_gen: v5e
topology: v5e:2x2
jax: 0.10.0
libtpu: 0.0.40
codegen_flags: <defaults>
</compile_context>

<pallas_src>
import functools

import jax
import jax.numpy as jnp
from jax import lax
from jax.experimental import pallas as pl
from jax.experimental.pallas import tpu as pltpu

TAO = 1.0
NORM_EPS = 1e-12   # F.normalize default eps
COS_EPS = 1e-8     # nn.CosineSimilarity default eps


def _contrastive_tile_kernel(fea_ref, pos_ref, neg_ref, out_ref, *,
                             n_total, tile_n, tao):
    i = pl.program_id(0)

    f = fea_ref[...].astype(jnp.float32)
    p = pos_ref[...].astype(jnp.float32)
    n = neg_ref[...].astype(jnp.float32)

    # --- five row reductions; everything after runs on [tile_n, 1] data ---
    ss_f = jnp.sum(f * f, axis=1, keepdims=True)
    ss_p = jnp.sum(p * p, axis=1, keepdims=True)
    ss_n = jnp.sum(n * n, axis=1, keepdims=True)
    d_fp = jnp.sum(f * p, axis=1, keepdims=True)
    d_fn = jnp.sum(f * n, axis=1, keepdims=True)

    nrm_f = jnp.sqrt(ss_f)
    nrm_p = jnp.sqrt(ss_p)
    nrm_n = jnp.sqrt(ss_n)

    # F.normalize eps path (per-row scalars only)
    inv_f = 1.0 / jnp.maximum(nrm_f, NORM_EPS)
    inv_p = 1.0 / jnp.maximum(nrm_p, NORM_EPS)
    inv_n = 1.0 / jnp.maximum(nrm_n, NORM_EPS)

    # norms of the normalized rows (== 1 except for ~zero rows) for the
    # CosineSimilarity eps clamp -> exact PyTorch two-eps semantics.
    na = nrm_f * inv_f
    nb_p = nrm_p * inv_p
    nb_n = nrm_n * inv_n

    pos_sim = (d_fp * inv_f * inv_p) / jnp.maximum(na * nb_p, COS_EPS)
    neg_sim = (d_fn * inv_f * inv_n) / jnp.maximum(na * nb_n, COS_EPS)

    # -log(exp(ps/t) / (exp(ps/t) + exp(ns/t))) == softplus((ns - ps)/t)
    # stable form: max(d, 0) + log(1 + exp(-|d|)); argument of exp is <= 0,
    # argument of log is in (1, 2], so no overflow for any tao.
    delta = (neg_sim - pos_sim) * (1.0 / tao)
    loss_rows = jnp.maximum(delta, 0.0) + jnp.log(1.0 + jnp.exp(-jnp.abs(delta)))

    # --- mask tail rows (N not a multiple of tile_n) before the partial sum ---
    row_ids = i * tile_n + lax.broadcasted_iota(jnp.int32, (tile_n, 1), 0)
    loss_rows = jnp.where(row_ids < n_total, loss_rows, 0.0)

    partial = jnp.sum(loss_rows)                               # scalar

    # Write the tile's partial sum only to element [0, 0] of its lane-dense
    # (8, 128) output block (zeros elsewhere) -> flat jnp.sum in the wrapper.
    r = lax.broadcasted_iota(jnp.int32, (8, 128), 0)
    c = lax.broadcasted_iota(jnp.int32, (8, 128), 1)
    out_ref[...] = jnp.where((r == 0) & (c == 0), partial, 0.0).astype(jnp.float32)


def _vmem_limit_and_budget():
    """Generation-aware scoped-VMEM limit and tile-sizing budget (bytes)."""
    cap = None
    try:
        cap = getattr(pltpu.get_tpu_info(), "vmem_capacity_bytes", None)
    except Exception:
        cap = None
    if not cap:
        cap = 64 * 1024 * 1024            # conservative fallback (v7x per-TC)
    # v5e/v6e (128 MiB physical) -> 64 MiB limit ; v7x (64 MiB) -> 48 MiB limit
    limit = int(min(64 * 1024 * 1024, (cap * 3) // 4))
    budget = (limit * 3) // 4             # headroom for output bufs / misc
    return limit, budget


def _pick_tile_n(n, d, itemsize, budget):
    """Largest multiple-of-8 row count whose live VMEM fits the budget."""
    # per-row live bytes for one grid step:
    per_row = 3 * 2 * d * itemsize        # 3 inputs x 2 pipeline buffers
    if itemsize < 4:
        per_row += 3 * d * 4              # in-kernel f32 upcast copies
    per_row += 2 * d * 4                  # ~2 live elementwise product temps
    per_row += 10 * 128 * 4               # lane-padded [tile_n, 1] f32 columns
    rows = max(8, (int(budget) // per_row) // 8 * 8)
    n_pad = max(8, ((n + 7) // 8) * 8)
    return int(min(n_pad, rows))


def contrastive_loss(fea, pos_fea, neg_fea, tao=TAO, tile_n=None):
    N, D = fea.shape
    itemsize = jnp.dtype(fea.dtype).itemsize

    vmem_limit, budget = _vmem_limit_and_budget()
    if tile_n is None:
        tile_n = _pick_tile_n(N, D, itemsize, budget)

    grid = pl.cdiv(N, tile_n)
    kernel = functools.partial(_contrastive_tile_kernel,
                               n_total=N, tile_n=tile_n, tao=float(tao))

    partials = pl.pallas_call(
        kernel,
        out_shape=jax.ShapeDtypeStruct((8 * grid, 128), jnp.float32),
        grid_spec=pltpu.PrefetchScalarGridSpec(
            num_scalar_prefetch=0,
            grid=(grid,),
            in_specs=[
                pl.BlockSpec((tile_n, D), lambda i: (i, 0)),
                pl.BlockSpec((tile_n, D), lambda i: (i, 0)),
                pl.BlockSpec((tile_n, D), lambda i: (i, 0)),
            ],
            out_specs=pl.BlockSpec((8, 128), lambda i: (i, 0)),
        ),
        compiler_params=pltpu.CompilerParams(
            dimension_semantics=("parallel",),     # disjoint tiles -> both TCs on v7x
            vmem_limit_bytes=vmem_limit,
        ),
    )(fea, pos_fea, neg_fea)

    # one non-zero entry per tile; flat sum, then true-N mean
    return jnp.sum(partials) / N


def _reference(fea, pos_fea, neg_fea, tao=TAO):
    fea = fea.astype(jnp.float32)
    pos_fea = pos_fea.astype(jnp.float32)
    neg_fea = neg_fea.astype(jnp.float32)

    def l2n(x):
        return x / jnp.maximum(
            jnp.linalg.norm(x, axis=1, keepdims=True), NORM_EPS)

    f, p, n = l2n(fea), l2n(pos_fea), l2n(neg_fea)

    def cs(a, b):
        return jnp.sum(a * b, -1) / jnp.maximum(
            jnp.linalg.norm(a, axis=-1) * jnp.linalg.norm(b, axis=-1), COS_EPS)

    ps, ns = cs(f, p), cs(f, n)
    logits = jnp.exp(ps / tao) / (jnp.exp(ps / tao) + jnp.exp(ns / tao))
    return jnp.mean(-jnp.log(logits))


if __name__ == "__main__":
    key = jax.random.PRNGKey(0)
    k1, k2, k3 = jax.random.split(key, 3)
    N, D = 8, 32
    fea = jax.random.normal(k1, (N, D), dtype=jnp.float32)
    pos_fea = jax.random.normal(k2, (N, D), dtype=jnp.float32)
    neg_fea = jax.random.normal(k3, (N, D), dtype=jnp.float32)

    loss = contrastive_loss(fea, pos_fea, neg_fea)
    jax.block_until_ready(loss)
    ref = _reference(fea, pos_fea, neg_fea)
    assert jnp.allclose(loss, ref, atol=1e-5, rtol=1e-5), (loss, ref)

    # tiled + tail-masked path (N not a multiple of tile_n)
    N2, D2 = 50, 128
    k4, k5, k6 = jax.random.split(jax.random.PRNGKey(1), 3)
    a = jax.random.normal(k4, (N2, D2), dtype=jnp.float32)
    b = jax.random.normal(k5, (N2, D2), dtype=jnp.float32)
    c = jax.random.normal(k6, (N2, D2), dtype=jnp.float32)
    loss2 = contrastive_loss(a, b, c, tile_n=16)
    jax.block_until_ready(loss2)
    ref2 = _reference(a, b, c)
    assert jnp.allclose(loss2, ref2, atol=1e-5, rtol=1e-5), (loss2, ref2)

    # bf16 inputs (halves HBM bytes read; kernel upcasts to f32 internally)
    a16, b16, c16 = a.astype(jnp.bfloat16), b.astype(jnp.bfloat16), c.astype(jnp.bfloat16)
    loss3 = contrastive_loss(a16, b16, c16)
    jax.block_until_ready(loss3)
    ref3 = _reference(a16, b16, c16)
    assert jnp.allclose(loss3, ref3, atol=1e-5, rtol=1e-5), (loss3, ref3)

    print("KERNEL_OK")
</pallas_src>

<mosaic_0001>
module attributes {stable_mosaic.version = 11 : i64} {
  func.func @_contrastive_tile_kernel(%arg0: i32, %arg1: memref<8x32xf32, #tpu.memory_space<vmem>>, %arg2: memref<8x32xf32, #tpu.memory_space<vmem>>, %arg3: memref<8x32xf32, #tpu.memory_space<vmem>>, %arg4: memref<8x128xf32, #tpu.memory_space<vmem>>) attributes {dimension_semantics = [#tpu.dimension_semantics<parallel>], iteration_bounds = array<i64: 1>, scalar_prefetch = 0 : i64, scratch_operands = 0 : i64, tpu.core_type = #tpu.core_type<tc>, window_params = [{transform_indices = @transform_0, window_bounds = array<i64: 8, 32>}, {transform_indices = @transform_1, window_bounds = array<i64: 8, 32>}, {transform_indices = @transform_2, window_bounds = array<i64: 8, 32>}, {transform_indices = @transform_3, window_bounds = array<i64: 8, 128>}]} {
    %c0 = arith.constant 0 : index
    %c0_0 = arith.constant 0 : index
    %0 = vector.load %arg1[%c0, %c0_0] : memref<8x32xf32, #tpu.memory_space<vmem>>, vector<8x32xf32>
    %c0_1 = arith.constant 0 : index
    %c0_2 = arith.constant 0 : index
    %1 = vector.load %arg2[%c0_1, %c0_2] : memref<8x32xf32, #tpu.memory_space<vmem>>, vector<8x32xf32>
    %c0_3 = arith.constant 0 : index
    %c0_4 = arith.constant 0 : index
    %2 = vector.load %arg3[%c0_3, %c0_4] : memref<8x32xf32, #tpu.memory_space<vmem>>, vector<8x32xf32>
    %3 = arith.mulf %0, %0 : vector<8x32xf32>
    %cst = arith.constant dense<0.000000e+00> : vector<8xf32>
    %4 = vector.multi_reduction <add>, %3, %cst [1] : vector<8x32xf32> to vector<8xf32>
    %5 = vector.shape_cast %4 : vector<8xf32> to vector<8x1xf32>
    %6 = arith.mulf %1, %1 : vector<8x32xf32>
    %cst_5 = arith.constant dense<0.000000e+00> : vector<8xf32>
    %7 = vector.multi_reduction <add>, %6, %cst_5 [1] : vector<8x32xf32> to vector<8xf32>
    %8 = vector.shape_cast %7 : vector<8xf32> to vector<8x1xf32>
    %9 = arith.mulf %2, %2 : vector<8x32xf32>
    %cst_6 = arith.constant dense<0.000000e+00> : vector<8xf32>
    %10 = vector.multi_reduction <add>, %9, %cst_6 [1] : vector<8x32xf32> to vector<8xf32>
    %11 = vector.shape_cast %10 : vector<8xf32> to vector<8x1xf32>
    %12 = arith.mulf %0, %1 : vector<8x32xf32>
    %cst_7 = arith.constant dense<0.000000e+00> : vector<8xf32>
    %13 = vector.multi_reduction <add>, %12, %cst_7 [1] : vector<8x32xf32> to vector<8xf32>
    %14 = vector.shape_cast %13 : vector<8xf32> to vector<8x1xf32>
    %15 = arith.mulf %0, %2 : vector<8x32xf32>
    %cst_8 = arith.constant dense<0.000000e+00> : vector<8xf32>
    %16 = vector.multi_reduction <add>, %15, %cst_8 [1] : vector<8x32xf32> to vector<8xf32>
    %17 = vector.shape_cast %16 : vector<8xf32> to vector<8x1xf32>
    %18 = math.sqrt %5 : vector<8x1xf32>
    %19 = math.sqrt %8 : vector<8x1xf32>
    %20 = math.sqrt %11 : vector<8x1xf32>
    %cst_9 = arith.constant 9.99999996E-13 : f32
    %21 = vector.broadcast %cst_9 : f32 to vector<8x1xf32>
    %22 = arith.maximumf %18, %21 : vector<8x1xf32>
    %cst_10 = arith.constant 1.000000e+00 : f32
    %23 = vector.broadcast %cst_10 : f32 to vector<8x1xf32>
    %24 = arith.divf %23, %22 : vector<8x1xf32>
    %cst_11 = arith.constant 9.99999996E-13 : f32
    %25 = vector.broadcast %cst_11 : f32 to vector<8x1xf32>
    %26 = arith.maximumf %19, %25 : vector<8x1xf32>
    %cst_12 = arith.constant 1.000000e+00 : f32
    %27 = vector.broadcast %cst_12 : f32 to vector<8x1xf32>
    %28 = arith.divf %27, %26 : vector<8x1xf32>
    %cst_13 = arith.constant 9.99999996E-13 : f32
    %29 = vector.broadcast %cst_13 : f32 to vector<8x1xf32>
    %30 = arith.maximumf %20, %29 : vector<8x1xf32>
    %cst_14 = arith.constant 1.000000e+00 : f32
    %31 = vector.broadcast %cst_14 : f32 to vector<8x1xf32>
    %32 = arith.divf %31, %30 : vector<8x1xf32>
    %33 = arith.mulf %18, %24 : vector<8x1xf32>
    %34 = arith.mulf %19, %28 : vector<8x1xf32>
    %35 = arith.mulf %20, %32 : vector<8x1xf32>
    %36 = arith.mulf %14, %24 : vector<8x1xf32>
    %37 = arith.mulf %36, %28 : vector<8x1xf32>
    %38 = arith.mulf %33, %34 : vector<8x1xf32>
    %cst_15 = arith.constant 9.99999993E-9 : f32
    %39 = vector.broadcast %cst_15 : f32 to vector<8x1xf32>
    %40 = arith.maximumf %38, %39 : vector<8x1xf32>
    %41 = arith.divf %37, %40 : vector<8x1xf32>
    %42 = arith.mulf %17, %24 : vector<8x1xf32>
    %43 = arith.mulf %42, %32 : vector<8x1xf32>
    %44 = arith.mulf %33, %35 : vector<8x1xf32>
    %cst_16 = arith.constant 9.99999993E-9 : f32
    %45 = vector.broadcast %cst_16 : f32 to vector<8x1xf32>
    %46 = arith.maximumf %44, %45 : vector<8x1xf32>
    %47 = arith.divf %43, %46 : vector<8x1xf32>
    %48 = arith.subf %47, %41 : vector<8x1xf32>
    %cst_17 = arith.constant 1.000000e+00 : f32
    %49 = vector.broadcast %cst_17 : f32 to vector<8x1xf32>
    %50 = arith.mulf %48, %49 : vector<8x1xf32>
    %cst_18 = arith.constant 0.000000e+00 : f32
    %51 = vector.broadcast %cst_18 : f32 to vector<8x1xf32>
    %52 = arith.maximumf %50, %51 : vector<8x1xf32>
    %53 = math.absf %50 : vector<8x1xf32>
    %cst_19 = arith.constant 0.000000e+00 : f32
    %54 = vector.broadcast %cst_19 : f32 to vector<8x1xf32>
    %55 = arith.subf %54, %53 : vector<8x1xf32>
    %56 = math.exp %55 : vector<8x1xf32>
    %cst_20 = arith.constant 1.000000e+00 : f32
    %57 = vector.broadcast %cst_20 : f32 to vector<8x1xf32>
    %58 = arith.addf %57, %56 : vector<8x1xf32>
    %59 = math.log %58 : vector<8x1xf32>
    %60 = arith.addf %52, %59 : vector<8x1xf32>
    %c8_i32 = arith.constant 8 : i32
    %61 = arith.muli %arg0, %c8_i32 : i32
    %62 = tpu.iota {dimensions = array<i32: 0>} : vector<8x1xi32>
    %63 = vector.broadcast %61 : i32 to vector<8x1xi32>
    %64 = arith.addi %63, %62 : vector<8x1xi32>
    %c8_i32_21 = arith.constant 8 : i32
    %65 = vector.broadcast %c8_i32_21 : i32 to vector<8x1xi32>
    %66 = arith.cmpi slt, %64, %65 : vector<8x1xi32>
    %cst_22 = arith.constant 0.000000e+00 : f32
    %67 = vector.broadcast %cst_22 : f32 to vector<8x1xf32>
    %68 = arith.select %66, %60, %67 : vector<8x1xi1>, vector<8x1xf32>
    %69 = vector.shape_cast %68 : vector<8x1xf32> to vector<1x8x1xf32>
    %cst_23 = arith.constant dense<0.000000e+00> : vector<1xf32>
    %70 = vector.multi_reduction <add>, %69, %cst_23 [1, 2] : vector<1x8x1xf32> to vector<1xf32>
    %71 = vector.shape_cast %70 : vector<1xf32> to vector<1x1x1xf32>
    %72 = vector.extract %71[0, 0, 0] : f32 from vector<1x1x1xf32>
    %73 = tpu.iota {dimensions = array<i32: 0>} : vector<8x128xi32>
    %74 = tpu.iota {dimensions = array<i32: 1>} : vector<8x128xi32>
    %c0_i32 = arith.constant 0 : i32
    %75 = vector.broadcast %c0_i32 : i32 to vector<8x128xi32>
    %76 = arith.cmpi eq, %73, %75 : vector<8x128xi32>
    %c0_i32_24 = arith.constant 0 : i32
    %77 = vector.broadcast %c0_i32_24 : i32 to vector<8x128xi32>
    %78 = arith.cmpi eq, %74, %77 : vector<8x128xi32>
    %79 = arith.andi %76, %78 : vector<8x128xi1>
    %cst_25 = arith.constant 0.000000e+00 : f32
    %80 = vector.broadcast %72 : f32 to vector<8x128xf32>
    %81 = vector.broadcast %cst_25 : f32 to vector<8x128xf32>
    %82 = arith.select %79, %80, %81 : vector<8x128xi1>, vector<8x128xf32>
    %c0_26 = arith.constant 0 : index
    %c0_27 = arith.constant 0 : index
    %83 = vector.load %arg4[%c0_26, %c0_27] : memref<8x128xf32, #tpu.memory_space<vmem>>, vector<8x128xf32>
    tpu.vector_store %arg4[%c0_26, %c0_27], %82 {strides = array<i32>} : memref<8x128xf32, #tpu.memory_space<vmem>>, vector<8x128xf32>,
    return
  }
  func.func @transform_0(%arg0: i32) -> (i32, i32) {
    %c0_i32 = arith.constant 0 : i32
    %c0_i32_0 = arith.constant 0 : i32
    return %arg0, %c0_i32 : i32, i32
  }
  func.func @transform_1(%arg0: i32) -> (i32, i32) {
    %c0_i32 = arith.constant 0 : i32
    %c0_i32_0 = arith.constant 0 : i32
    return %arg0, %c0_i32 : i32, i32
  }
  func.func @transform_2(%arg0: i32) -> (i32, i32) {
    %c0_i32 = arith.constant 0 : i32
    %c0_i32_0 = arith.constant 0 : i32
    return %arg0, %c0_i32 : i32, i32
  }
  func.func @transform_3(%arg0: i32) -> (i32, i32) {
    %c0_i32 = arith.constant 0 : i32
    %c0_i32_0 = arith.constant 0 : i32
    return %arg0, %c0_i32 : i32, i32
  }
}

</mosaic_0001>

<bundles_post_ra>
// kernel: tpu_custom_call.1
= control target key start
LH: loop header
LB: loop body
LE: loop exit
PB: predicated region body
PF: predicated region fallthrough
CT: control target
= control target key end

     0   :  { %8 = vsyncpa [#allocation3], 0  ;;  %s423_s0 = inlined_call_operand.hbm [shape: f32[8,32], index: 0, kind: input, shape index: {}]   ;;  %s424_s1 = inlined_call_operand.hbm [shape: f32[8,32], index: 1, kind: input, shape index: {}]   ;;  %s425_s2 = inlined_call_operand.hbm [shape: f32[8,32], index: 2, kind: input, shape index: {}]   ;;  %s426_s3 = inlined_call_operand.hbm [shape: f32[8,128], index: 3, kind: output, shape index: {}]  }
   0x1   :  { %9 = vsyncpa [#allocation6], 0  ;;  %s27_s14 = sshll.u32 %s424_s1, 4  ;;  %s28_s14 = int_to_ptr.hbm [resolvable:$true] %s27_s14 }
   0x2   :  { %10 = vsyncpa [#allocation4], 0  ;;  %s387_s15 = smov [#allocation5]   ;;  %s16_s19 = sshll.u32 %s423_s0, 4  ;;  %s17_s19 = int_to_ptr.hbm [resolvable:$true] %s16_s19 }
   0x3   :  { %s29_s16 = sshll.u32 %s387_s15, 4  ;;  %s388_s20 = smov [#allocation2]   ;;  %s30_s16 = int_to_ptr.vmem [resolvable:$true] %s29_s16 }
   0x4   :  { %32 = dma.hbm_to_vmem [thread:$0]  %s28_s14, 128, %s30_s16, [#allocation6]  }
   0x5   :  { %s18_s21 = sshll.u32 %s388_s20, 4  ;;  %s38_s24 = sshll.u32 %s425_s2, 4  ;;  %s19_s21 = int_to_ptr.vmem [resolvable:$true] %s18_s21  ;;  %s39_s24 = int_to_ptr.hbm [resolvable:$true] %s38_s24 }
   0x6   :  { %21 = dma.hbm_to_vmem [thread:$0]  %s17_s19, 128, %s19_s21, [#allocation3]  }
   0x7   :  { %s389_s1 = smov [#allocation7]  }
   0x8   :  { %s40_s25 = sshll.u32 %s389_s1, 4  ;;  %s41_s25 = int_to_ptr.vmem [resolvable:$true] %s40_s25 }
   0x9   :  { %43 = dma.hbm_to_vmem [thread:$0]  %s39_s24, 128, %s41_s25, [#allocation6]  }
   0xa   :  { %381 = dma.done.wait [#allocation3], 128  }
   0xb   :  { %382 = vsyncadd [#allocation3], 4294967168 }
   0xc   :  { %383 = dma.done.wait [#allocation6], 256  }
   0xd   :  { %384 = vsyncadd [#allocation6], 4294967040  ;;  %v58_v0 = vld [vmem:[#allocation7] sm:$0xff]  ;;  %vm60_vm0 = vcmask 261120   ;;  %v56_v1 = vld [vmem:[#allocation2] sm:$0xff]  ;;  %s390_s0 = smov [#allocation8]  }
   0xe   :  { %v68_v2 = vmul.f32 %v58_v0, %v58_v0  ;;  %v59_v3 = vmul.f32 %v56_v1, %v56_v1  ;;  %v76_v4 = vmul.f32 %v58_v0, %v56_v1  ;;  %v57_v5 = vld [vmem:[#allocation5] sm:$0xff]  ;;  %s246_s2 = sshll.u32 %s390_s0, 4  ;;  %s248_s28 = sshll.u32 %s426_s3, 4  ;;  %s247_s2 = int_to_ptr.vmem [resolvable:$true] %s246_s2  ;;  %s249_s28 = int_to_ptr.hbm [resolvable:$true] %s248_s28 }
   0xf   :  { %v64_v9 = vmul.f32 %v57_v5, %v57_v5  ;;  %v72_v10 = vmul.f32 %v57_v5, %v56_v1 }
  0x10   :  { %v69_v6 = vsel %vm60_vm0, %v68_v2, 0.0  ;;  %v61_v7 = vsel %vm60_vm0, %v59_v3, 0.0  ;;  %v77_v8 = vsel %vm60_vm0, %v76_v4, 0.0 }
  0x11   :  { %70 = vadd.xlane.f32.xlu1 %v69_v6  ;;  %62 = vadd.xlane.f32.xlu0 %v61_v7  ;;  %v65_v11 = vsel %vm60_vm0, %v64_v9, 0.0  ;;  %v73_v12 = vsel %vm60_vm0, %v72_v10, 0.0 }
  0x12   :  { %78 = vadd.xlane.f32.xlu2 %v77_v8 }
  0x19   :  { %66 = vadd.xlane.f32.xlu0 %v65_v11  ;;  %74 = vadd.xlane.f32.xlu1 %v73_v12 }
  0x84   :  { %v71_v13 = vpop.xlane.xlu1 %70  ;;  %v63_v14 = vpop.xlane.xlu0 %62 }
  0x85   :  { %265 = vrsqrt.f32 %v71_v13  ;;  %vm111_vm1 = vcmp.eq.f32.partialorder %v71_v13, inf  ;;  %vm113_vm2 = vcmp.eq.f32.partialorder %v71_v13, 0.0  ;;  %v114_v32 = vand.u32 2147483648, %v71_v13 }
  0x86   :  { %267 = vrsqrt.f32 %v63_v14  ;;  %vm87_vm3 = vcmp.eq.f32.partialorder %v63_v14, inf  ;;  %v90_v36 = vand.u32 2147483648, %v63_v14  ;;  %vm89_vm4 = vcmp.eq.f32.partialorder %v63_v14, 0.0 }
  0x8b   :  { %v266_v15 = vpop.eup %265 }
  0x8c   :  { %v268_v16 = vpop.eup %267  ;;  %v105_v17 = vmul.f32 %v266_v15, %v71_v13  ;;  %v67_v18 = vpop.xlane.xlu0 %66 }
  0x8d   :  { %v81_v19 = vmul.f32 %v268_v16, %v63_v14  ;;  %269 = vrsqrt.f32 %v67_v18  ;;  %vm99_vm5 = vcmp.eq.f32.partialorder %v67_v18, inf  ;;  %v102_v45 = vand.u32 2147483648, %v67_v18 }
  0x8e   :  { %v106_v20 = vmul.f32 %v266_v15, %v105_v17  ;;  %vm101_vm6 = vcmp.eq.f32.partialorder %v67_v18, 0.0 }
  0x8f   :  { %v82_v21 = vmul.f32 %v268_v16, %v81_v19 }
  0x90   :  { %v107_v22 = vmul.f32 0.5, %v106_v20 }
  0x91   :  { %v83_v23 = vmul.f32 0.5, %v82_v21 }
  0x92   :  { %v108_v24 = vsub.f32 1.5, %v107_v22 }
  0x93   :  { %v270_v25 = vpop.eup %269  ;;  %v84_v26 = vsub.f32 1.5, %v83_v23 }
  0x94   :  { %v93_v27 = vmul.f32 %v270_v25, %v67_v18  ;;  %v109_v28 = vmul.f32 %v266_v15, %v108_v24 }
  0x95   :  { %v85_v29 = vmul.f32 %v268_v16, %v84_v26 }
  0x96   :  { %v94_v30 = vmul.f32 %v270_v25, %v93_v27  ;;  %v110_v31 = vmul.f32 %v109_v28, %v71_v13  ;;  %v79_v27 = vpop.xlane.xlu2 %78 }
  0x97   :  { %v86_v33 = vmul.f32 %v85_v29, %v63_v14 }
  0x98   :  { %v95_v34 = vmul.f32 0.5, %v94_v30  ;;  %v112_v35 = vsel %vm111_vm1, %v71_v13, %v110_v31 }
  0x99   :  { %v115_v37 = vsel %vm113_vm2, %v114_v32, %v112_v35  ;;  %v88_v38 = vsel %vm87_vm3, %v63_v14, %v86_v33 }
  0x9a   :  { %v96_v39 = vsub.f32 1.5, %v95_v34  ;;  %v148_v40 = vmax.f32 %v115_v37, 1e-12  ;;  %v91_v41 = vsel %vm89_vm4, %v90_v36, %v88_v38  ;;  %v75_v34 = vpop.xlane.xlu1 %74 }
  0x9b   :  { %v116_v42 = vmax.f32 %v91_v41, 1e-12 }
  0x9c   :  { %v97_v43 = vmul.f32 %v270_v25, %v96_v39  ;;  %271 = vrcp.f32 %v148_v40  ;;  %v160_v54 = vand.u32 2147483648, %v148_v40  ;;  %v158_v57 = vand.u32 2147483647, %v148_v40 }
  0x9d   :  { %273 = vrcp.f32 %v116_v42  ;;  %v128_v58 = vand.u32 2147483648, %v116_v42  ;;  %v126_v60 = vand.u32 2147483647, %v116_v42  ;;  %vm154_vm9 = vweird.f32 %v148_v40 }
  0x9e   :  { %v98_v44 = vmul.f32 %v97_v43, %v67_v18  ;;  %v161_v63 = vor.u32 1.1754944e-38, %v160_v54  ;;  %vm122_vm11 = vweird.f32 %v116_v42  ;;  %vm159_vm12 = vcmp.eq.f32.partialorder %v158_v57, 8.507059e+37 }
  0x9f   :  { %v129_v2 = vor.u32 1.1754944e-38, %v128_v58  ;;  %vm127_vm14 = vcmp.eq.f32.partialorder %v126_v60, 8.507059e+37 }
  0xa0   :  { %v100_v46 = vsel %vm99_vm5, %v67_v18, %v98_v44 }
  0xa1   :  { %v103_v47 = vsel %vm101_vm6, %v102_v45, %v100_v46 }
  0xa2   :  { %v272_v48 = vpop.eup %271  ;;  %v132_v49 = vmax.f32 %v103_v47, 1e-12 }
  0xa3   :  { %v274_v50 = vpop.eup %273  ;;  %v150_v51 = vmul.f32 %v272_v48, %v148_v40  ;;  %vm155_vm7 = vweird.f32 %v272_v48 }
  0xa4   :  { %v118_v52 = vmul.f32 %v274_v50, %v116_v42  ;;  %275 = vrcp.f32 %v132_v49  ;;  %vm123_vm8 = vweird.f32 %v274_v50  ;;  %vm156_vm10 = vmor %vm154_vm9, %vm155_vm7  ;;  %v144_v11 = vand.u32 2147483648, %v132_v49 }
  0xa5   :  { %v151_v53 = vsub.f32 1.0, %v150_v51  ;;  %vm124_vm13 = vmor %vm122_vm11, %vm123_vm8  ;;  %v142_v13 = vand.u32 2147483647, %v132_v49  ;;  %vm138_vm0 = vweird.f32 %v132_v49  ;;  %vm222_vm11 = vcmask 7168  }
  0xa6   :  { %v119_v55 = vsub.f32 1.0, %v118_v52  ;;  %v145_v17 = vor.u32 1.1754944e-38, %v144_v11 }
  0xa7   :  { %v152_v56 = vmul.f32 %v272_v48, %v151_v53  ;;  %vm143_vm2 = vcmp.eq.f32.partialorder %v142_v13, 8.507059e+37 }
  0xa8   :  { %v120_v59 = vmul.f32 %v274_v50, %v119_v55 }
  0xa9   :  { %v153_v61 = vadd.f32 %v272_v48, %v152_v56 }
  0xaa   :  { %v276_v62 = vpop.eup %275  ;;  %v121_v0 = vadd.f32 %v274_v50, %v120_v59 }
  0xab   :  { %v157_v1 = vsel %vm156_vm10, %v272_v48, %v153_v61  ;;  %v134_v3 = vmul.f32 %v276_v62, %v132_v49  ;;  %vm139_vm15 = vweird.f32 %v276_v62 }
  0xac   :  { %v162_v4 = vsel %vm159_vm12, %v161_v63, %v157_v1  ;;  %v125_v5 = vsel %vm124_vm13, %v274_v50, %v121_v0  ;;  %vm140_vm1 = vmor %vm138_vm0, %vm139_vm15 }
  0xad   :  { %v166_v6 = vmul.f32 %v162_v4, %v115_v37  ;;  %v130_v7 = vsel %vm127_vm14, %v129_v2, %v125_v5  ;;  %v135_v8 = vsub.f32 1.0, %v134_v3 }
  0xae   :  { %v164_v9 = vmul.f32 %v130_v7, %v91_v41  ;;  %v186_v33 = vmul.f32 %v130_v7, %v79_v27  ;;  %v167_v40 = vmul.f32 %v130_v7, %v75_v34 }
  0xaf   :  { %v136_v10 = vmul.f32 %v276_v62, %v135_v8 }
  0xb0   :  { %v188_v12 = vmul.f32 %v166_v6, %v164_v9  ;;  %v187_v44 = vmul.f32 %v186_v33, %v162_v4  ;;  %v216_v4 = vlaneseq }
  0xb1   :  { %v137_v14 = vadd.f32 %v276_v62, %v136_v10 }
  0xb2   :  { %v189_v15 = vmax.f32 %v188_v12, 1e-08  ;;  %v217_v5 = vshrl.u32 %v216_v4, 7  ;;  %v234_v6 = vand.u32 127, %v216_v4 }
  0xb3   :  { %v141_v16 = vsel %vm140_vm1, %v276_v62, %v137_v14 }
  0xb4   :  { %277 = vrcp.f32 %v189_v15  ;;  %v146_v18 = vsel %vm143_vm2, %v145_v17, %v141_v16  ;;  %v201_v30 = vand.u32 2147483648, %v189_v15  ;;  %vm195_vm4 = vweird.f32 %v189_v15 }
  0xb5   :  { %v165_v19 = vmul.f32 %v146_v18, %v103_v47  ;;  %v199_v31 = vand.u32 2147483647, %v189_v15  ;;  %v168_v45 = vmul.f32 %v167_v40, %v146_v18  ;;  %vm235_vm12 = vcmp.eq.s32.totalorder %v217_v5, 0 }
  0xb6   :  { %v202_v39 = vor.u32 1.1754944e-38, %v201_v30  ;;  %vm236_vm13 = vcmp.eq.s32.totalorder %v234_v6, 0 }
  0xb7   :  { %v169_v20 = vmul.f32 %v165_v19, %v164_v9  ;;  %vm200_vm7 = vcmp.eq.f32.partialorder %v199_v31, 8.507059e+37  ;;  %vm237_vm14 = vmand %vm235_vm12, %vm236_vm13 }
  0xb9   :  { %v170_v22 = vmax.f32 %v169_v20, 1e-08 }
  0xba   :  { %v278_v21 = vpop.eup %277 }
  0xbb   :  { %v191_v23 = vmul.f32 %v278_v21, %v189_v15  ;;  %279 = vrcp.f32 %v170_v22  ;;  %vm196_vm3 = vweird.f32 %v278_v21  ;;  %v182_v35 = vand.u32 2147483648, %v170_v22 }
  0xbc   :  { %vm197_vm5 = vmor %vm195_vm4, %vm196_vm3  ;;  %v180_v38 = vand.u32 2147483647, %v170_v22  ;;  %vm176_vm8 = vweird.f32 %v170_v22 }
  0xbd   :  { %v192_v24 = vsub.f32 1.0, %v191_v23  ;;  %v183_v43 = vor.u32 1.1754944e-38, %v182_v35 }
  0xbe   :  { %vm181_vm10 = vcmp.eq.f32.partialorder %v180_v38, 8.507059e+37 }
  0xbf   :  { %v193_v25 = vmul.f32 %v278_v21, %v192_v24 }
  0xc1   :  { %v280_v26 = vpop.eup %279  ;;  %v194_v28 = vadd.f32 %v278_v21, %v193_v25 }
  0xc2   :  { %v172_v29 = vmul.f32 %v280_v26, %v170_v22  ;;  %vm177_vm6 = vweird.f32 %v280_v26 }
  0xc3   :  { %v198_v36 = vsel %vm197_vm5, %v278_v21, %v194_v28  ;;  %vm178_vm9 = vmor %vm176_vm8, %vm177_vm6 }
  0xc4   :  { %v173_v32 = vsub.f32 1.0, %v172_v29  ;;  %v203_v42 = vsel %vm200_vm7, %v202_v39, %v198_v36 }
  0xc5   :  { %v204_v48 = vmul.f32 %v203_v42, %v187_v44 }
  0xc6   :  { %v174_v37 = vmul.f32 %v280_v26, %v173_v32 }
  0xc8   :  { %v175_v41 = vadd.f32 %v280_v26, %v174_v37 }
  0xca   :  { %v179_v46 = vsel %vm178_vm9, %v280_v26, %v175_v41 }
  0xcb   :  { %v184_v47 = vsel %vm181_vm10, %v183_v43, %v179_v46 }
  0xcc   :  { %v185_v49 = vmul.f32 %v184_v47, %v168_v45 }
  0xce   :  { %v205_v50 = vsub.f32 %v204_v48, %v185_v49 }
  0xd0   :  { %v207_v51 = vand.u32 2147483647, %v205_v50  ;;  %v206_v57 = vmax.f32 %v205_v50, 0.0 }
  0xd2   :  { %v208_v52 = vsub.f32 0.0, %v207_v51 }
  0xd4   :  { %v209_v53 = vmul.f32 1.442695, %v208_v52 }
  0xd6   :  { %281 = vpow2.f32 %v209_v53 }
  0xdc   :  { %v282_v54 = vpop.eup %281 }
  0xdd   :  { %v211_v55 = vadd.f32 1.0, %v282_v54 }
  0xdf   :  { %283 = vlog2.f32 %v211_v55 }
  0xe5   :  { %v284_v56 = vpop.eup %283 }
  0xe6   :  { %v213_v58 = vmul.f32 0.6931472, %v284_v56 }
  0xe8   :  { %v214_v59 = vadd.f32 %v213_v58, %v206_v57 }
  0xea   :  { %v223_v60 = vsel %vm222_vm11, %v214_v59, 0.0 }
  0xeb   :  { %224 = vadd.xlane.f32.xlu2 %v223_v60 }
 0x15e   :  { %v225_v61 = vpop.xlane.xlu2 %224 }
 0x15f   :  { %v226_v62 = vrot.slane %v225_v61, 4 }
 0x161   :  { %v227_v63 = vadd.f32 %v226_v62, %v225_v61 }
 0x163   :  { %v228_v0 = vrot.slane %v227_v63, 2 }
 0x165   :  { %v229_v1 = vadd.f32 %v228_v0, %v227_v63 }
 0x167   :  { %v230_v2 = vrot.slane %v229_v1, 1 }
 0x169   :  { %v231_v3 = vadd.f32 %v230_v2, %v229_v1 }
 0x16b   :  { %259 = vpush %v231_v3 }
 0x19c   :  { %s260_s29 = spop %259 }
 0x19d   :  { %v238_v7 = vstv %s260_s29 }
 0x19e   :  { %v239_v8 = vsel %vm237_vm14, %v238_v7, 0.0 }
 0x19f   :  { %240 = vst [vmem:[#allocation8] sm:$0xff] %v239_v8 }
 0x1a0   :  { %251 = dma.vmem_to_hbm [thread:$0]  %s247_s2, 128, %s249_s28, [#allocation4]  }
 0x1a1   :  { %385 = dma.done.wait [#allocation4], 128  }
 0x1a2   :  { %386 = vsyncadd [#allocation4], 4294967168 }
 0x1a3   :  { %256 = vsyncpa [#allocation3], 1 }
 0x1a4   :  { %257 = vsyncpa [#allocation6], 1 }
 0x1a5   :  { %258 = vsyncpa [#allocation4], 1 }

</bundles_post_ra>
